<compile_context>
chip_gen: v7x
topology: tpu7x:2x2x1
jax: 0.10.0
libtpu: 0.0.40
codegen_flags: <defaults>
</compile_context>

<pallas_src>
import functools

import jax
import jax.numpy as jnp
from jax import lax
from jax.experimental import pallas as pl
from jax.experimental.pallas import tpu as pltpu

NUM_DIM = 32      # input feature dim (num_dim in the torch module)
HIDDEN = 16       # GCNConv(num_dim, 16)
NUM_CLASS = 4     # GCNConv(16, num_class)
N_NODES = 16      # number of graph nodes
N_EDGES = 32      # number of (random) edges

LANE = 128        # TPU lane width


def _round_up(v, m):
    return ((v + m - 1) // m) * m


def gcn_kernel(e_ref, x_ref, w1_ref, b1_ref, w2_ref, b2_ref, o_ref, *, num_class):
    n = x_ref.shape[0]
    e_pad = e_ref.shape[1]

    # ---- Fused adjacency build -------------------------------------------
    # e_ref is [2, E_pad] int32; the wrapper already appended reversed edges
    # and self loops, so ONE matmul yields the symmetric self-looped adjacency.
    node_iota = lax.broadcasted_iota(jnp.int32, (n, e_pad), 0)
    u_src = (node_iota == e_ref[0:1, :]).astype(jnp.bfloat16)   # [n, e_pad]
    u_dst = (node_iota == e_ref[1:2, :]).astype(jnp.bfloat16)   # [n, e_pad]
    dn = (((1,), (1,)), ((), ()))                                # A @ B^T on MXU
    a = jnp.minimum(
        lax.dot_general(u_dst, u_src, dn, preferred_element_type=jnp.float32),
        1.0)                                                     # dedup + diag -> 1

    # Symmetric normalization, materialized once and reused by both layers.
    # (a is symmetric, so the row-vector degrees equal the column degrees.)
    d_col = lax.rsqrt(jnp.maximum(jnp.sum(a, axis=1, keepdims=True), 1.0))  # [n,1]
    d_row = lax.rsqrt(jnp.maximum(jnp.sum(a, axis=0, keepdims=True), 1.0))  # [1,n]
    a_norm = (a * d_col * d_row).astype(jnp.bfloat16)            # D^-1/2 A D^-1/2

    x_bf = x_ref[...].astype(jnp.bfloat16)

    # ---- Layer 1: relu(A_hat @ (X @ W1) + b1) ----
    xw = jnp.dot(x_bf, w1_ref[...], preferred_element_type=jnp.float32)
    h1 = jnp.maximum(
        jnp.dot(a_norm, xw.astype(jnp.bfloat16),
                preferred_element_type=jnp.float32) + b1_ref[...],
        0.0)
    # F.dropout(x, training=self.training): identity in eval/inference mode.

    # ---- Layer 2: A_hat @ (H1 @ W2) + b2 ----
    hw = jnp.dot(h1.astype(jnp.bfloat16), w2_ref[...],
                 preferred_element_type=jnp.float32)
    h2 = jnp.dot(a_norm, hw.astype(jnp.bfloat16),
                 preferred_element_type=jnp.float32) + b2_ref[...]

    # log_softmax over dim=1, masked to the real class lanes.
    cls = lax.broadcasted_iota(jnp.int32, h2.shape, 1)
    h2 = jnp.where(cls < num_class, h2, jnp.float32(-1e30))
    m = jnp.max(h2, axis=-1, keepdims=True)
    s = h2 - m
    lse = jnp.log(jnp.sum(jnp.exp(s), axis=-1, keepdims=True))
    o_ref[...] = s - lse


def pad_params(w1, b1, w2, b2):
    """One-time padding / bf16 cast of the weights (hoisted out of the call path)."""
    f, h = w1.shape
    h2_, c = w2.shape
    h_pad = _round_up(h, LANE)
    c_pad = _round_up(c, LANE)
    w1p = jnp.pad(w1, ((0, 0), (0, h_pad - h))).astype(jnp.bfloat16)       # [f, 128]
    w2p = jnp.pad(w2, ((0, h_pad - h2_), (0, c_pad - c))).astype(jnp.bfloat16)  # [128,128]
    b1p = jnp.pad(b1, ((0, 0), (0, h_pad - h))).astype(jnp.float32)        # [1, 128]
    b2p = jnp.pad(b2, ((0, 0), (0, c_pad - c))).astype(jnp.float32)        # [1, 128]
    return w1p, b1p, w2p, b2p


def gcn_forward(x, edge_index, params, num_class):
    w1p, b1p, w2p, b2p = params
    n, f = x.shape
    e = edge_index.shape[1]
    h_pad = w1p.shape[1]
    c_pad = w2p.shape[1]

    # Per-call prep: tiny [2, e_pad] int32 edge buffer containing the directed
    # edges, their reverses, and the N self loops; padded with -1 (never
    # matches a node id).  ~1 KB of wrapper traffic.
    e_pad = _round_up(2 * e + n, LANE)
    loops = jnp.arange(n, dtype=jnp.int32)
    src = edge_index[0].astype(jnp.int32)
    dst = edge_index[1].astype(jnp.int32)
    ep = jnp.stack([jnp.concatenate([src, dst, loops]),
                    jnp.concatenate([dst, src, loops])])
    ep = jnp.pad(ep, ((0, 0), (0, e_pad - ep.shape[1])), constant_values=-1)

    flops = 2 * (n * n * e_pad           # one-hot -> adjacency matmul
                 + n * f * h_pad         # X @ W1
                 + n * n * h_pad         # A_hat @ (.)
                 + n * h_pad * c_pad     # H1 @ W2
                 + n * n * c_pad)        # A_hat @ (.)
    bytes_accessed = (ep.size * 4 + x.size * 4 + w1p.size * 2 + w2p.size * 2
                      + b1p.size * 4 + b2p.size * 4 + n * c_pad * 4)
    cost = pl.CostEstimate(flops=flops,
                           transcendentals=n * (c_pad + 3),
                           bytes_accessed=bytes_accessed)

    vmem = pl.BlockSpec(memory_space=pltpu.MemorySpace.VMEM)
    out = pl.pallas_call(
        functools.partial(gcn_kernel, num_class=num_class),
        out_shape=jax.ShapeDtypeStruct((n, c_pad), jnp.float32),
        in_specs=[vmem] * 6,
        out_specs=vmem,
        cost_estimate=cost,
    )(ep, x, w1p, b1p, w2p, b2p)

    return out[:, :num_class]


def init_params(key):
    k1, k2 = jax.random.split(key)
    # Glorot-style deterministic init (GCNConv default: glorot weight, zero bias)
    s1 = jnp.sqrt(6.0 / (NUM_DIM + HIDDEN))
    s2 = jnp.sqrt(6.0 / (HIDDEN + NUM_CLASS))
    w1 = jax.random.uniform(k1, (NUM_DIM, HIDDEN), jnp.float32, -s1, s1)
    w2 = jax.random.uniform(k2, (HIDDEN, NUM_CLASS), jnp.float32, -s2, s2)
    b1 = jnp.zeros((1, HIDDEN), jnp.float32)
    b2 = jnp.zeros((1, NUM_CLASS), jnp.float32)
    return w1, b1, w2, b2


if __name__ == "__main__":
    key = jax.random.PRNGKey(0)
    kx, ke, kp = jax.random.split(key, 3)

    # Node features [N, num_dim]
    x = jax.random.normal(kx, (N_NODES, NUM_DIM), jnp.float32)

    # Deterministic random edge list [2, E]
    edge_index = jax.random.randint(ke, (2, N_EDGES), 0, N_NODES, dtype=jnp.int32)

    w1, b1, w2, b2 = init_params(kp)
    params = pad_params(w1, b1, w2, b2)     # one-time, outside the call path
    params = jax.tree_util.tree_map(jax.block_until_ready, params)

    fwd = jax.jit(gcn_forward, static_argnames=("num_class",))
    out = fwd(x, edge_index, params, num_class=NUM_CLASS)
    out = jax.block_until_ready(out)

    # Sanity: rows of log_softmax should exp-sum to 1.
    row_sums = jnp.sum(jnp.exp(out), axis=1)
    assert out.shape == (N_NODES, NUM_CLASS)
    assert bool(jnp.all(jnp.abs(row_sums - 1.0) < 1e-4))
    assert bool(jnp.all(jnp.isfinite(out)))

    print("KERNEL_OK")
</pallas_src>

<mosaic_0001>
module attributes {stable_mosaic.version = 11 : i64} {
  func.func @gcn_kernel(%arg0: memref<2x128xi32, #tpu.memory_space<vmem>>, %arg1: memref<16x32xf32, #tpu.memory_space<vmem>>, %arg2: memref<32x128xbf16, #tpu.memory_space<vmem>>, %arg3: memref<1x128xf32, #tpu.memory_space<vmem>>, %arg4: memref<128x128xbf16, #tpu.memory_space<vmem>>, %arg5: memref<1x128xf32, #tpu.memory_space<vmem>>, %arg6: memref<16x128xf32, #tpu.memory_space<vmem>>) attributes {dimension_semantics = [], scalar_prefetch = 0 : i64, scratch_operands = 0 : i64, tpu.core_type = #tpu.core_type<tc>} {
    %0 = tpu.iota {dimensions = array<i32: 0>} : vector<16x128xi32>
    %c0 = arith.constant 0 : index
    %c0_0 = arith.constant 0 : index
    %1 = vector.load %arg0[%c0, %c0_0] : memref<2x128xi32, #tpu.memory_space<vmem>>, vector<1x128xi32>
    %2 = vector.broadcast %1 : vector<1x128xi32> to vector<16x128xi32>
    %3 = arith.cmpi eq, %0, %2 : vector<16x128xi32>
    %4 = arith.extui %3 : vector<16x128xi1> to vector<16x128xi32>
    %5 = arith.sitofp %4 : vector<16x128xi32> to vector<16x128xf32>
    %6 = arith.truncf %5 : vector<16x128xf32> to vector<16x128xbf16>
    %c1 = arith.constant 1 : index
    %c0_1 = arith.constant 0 : index
    %7 = vector.load %arg0[%c1, %c0_1] : memref<2x128xi32, #tpu.memory_space<vmem>>, vector<1x128xi32>
    %8 = vector.broadcast %7 : vector<1x128xi32> to vector<16x128xi32>
    %9 = arith.cmpi eq, %0, %8 : vector<16x128xi32>
    %10 = arith.extui %9 : vector<16x128xi1> to vector<16x128xi32>
    %11 = arith.sitofp %10 : vector<16x128xi32> to vector<16x128xf32>
    %12 = arith.truncf %11 : vector<16x128xf32> to vector<16x128xbf16>
    %cst = arith.constant dense<0.000000e+00> : vector<16x16xf32>
    %13 = tpu.matmul %12, %6, %cst {dimension_numbers = #tpu.dot_dimension_numbers<[1], [1], [0], [0], [0, 0, 1, 0], [], []>} : vector<16x128xbf16>, vector<16x128xbf16>, vector<16x16xf32> -> vector<16x16xf32>
    %cst_2 = arith.constant 1.000000e+00 : f32
    %14 = vector.broadcast %cst_2 : f32 to vector<16x16xf32>
    %15 = arith.minimumf %13, %14 : vector<16x16xf32>
    %cst_3 = arith.constant dense<0.000000e+00> : vector<16xf32>
    %16 = vector.multi_reduction <add>, %15, %cst_3 [1] : vector<16x16xf32> to vector<16xf32>
    %17 = vector.shape_cast %16 : vector<16xf32> to vector<16x1xf32>
    %cst_4 = arith.constant 1.000000e+00 : f32
    %18 = vector.broadcast %cst_4 : f32 to vector<16x1xf32>
    %19 = arith.maximumf %17, %18 : vector<16x1xf32>
    %20 = math.rsqrt %19 : vector<16x1xf32>
    %cst_5 = arith.constant dense<0.000000e+00> : vector<16xf32>
    %21 = vector.multi_reduction <add>, %15, %cst_5 [0] : vector<16x16xf32> to vector<16xf32>
    %22 = vector.shape_cast %21 : vector<16xf32> to vector<1x16xf32>
    %cst_6 = arith.constant 1.000000e+00 : f32
    %23 = vector.broadcast %cst_6 : f32 to vector<1x16xf32>
    %24 = arith.maximumf %22, %23 : vector<1x16xf32>
    %25 = math.rsqrt %24 : vector<1x16xf32>
    %26 = vector.broadcast %20 : vector<16x1xf32> to vector<16x16xf32>
    %27 = arith.mulf %15, %26 : vector<16x16xf32>
    %28 = vector.broadcast %25 : vector<1x16xf32> to vector<16x16xf32>
    %29 = arith.mulf %27, %28 : vector<16x16xf32>
    %30 = arith.truncf %29 : vector<16x16xf32> to vector<16x16xbf16>
    %c0_7 = arith.constant 0 : index
    %c0_8 = arith.constant 0 : index
    %31 = vector.load %arg1[%c0_7, %c0_8] : memref<16x32xf32, #tpu.memory_space<vmem>>, vector<16x32xf32>
    %32 = arith.truncf %31 : vector<16x32xf32> to vector<16x32xbf16>
    %c0_9 = arith.constant 0 : index
    %c0_10 = arith.constant 0 : index
    %33 = vector.load %arg2[%c0_9, %c0_10] : memref<32x128xbf16, #tpu.memory_space<vmem>>, vector<32x128xbf16>
    %cst_11 = arith.constant dense<0.000000e+00> : vector<16x128xf32>
    %34 = tpu.matmul %32, %33, %cst_11 {dimension_numbers = #tpu.dot_dimension_numbers<[1], [0], [0], [1], [0, 0, 1, 1], [], []>} : vector<16x32xbf16>, vector<32x128xbf16>, vector<16x128xf32> -> vector<16x128xf32>
    %35 = arith.truncf %34 : vector<16x128xf32> to vector<16x128xbf16>
    %cst_12 = arith.constant dense<0.000000e+00> : vector<16x128xf32>
    %36 = tpu.matmul %30, %35, %cst_12 {dimension_numbers = #tpu.dot_dimension_numbers<[1], [0], [0], [1], [0, 0, 1, 1], [], []>} : vector<16x16xbf16>, vector<16x128xbf16>, vector<16x128xf32> -> vector<16x128xf32>
    %c0_13 = arith.constant 0 : index
    %c0_14 = arith.constant 0 : index
    %37 = vector.load %arg3[%c0_13, %c0_14] : memref<1x128xf32, #tpu.memory_space<vmem>>, vector<1x128xf32>
    %38 = vector.broadcast %37 : vector<1x128xf32> to vector<16x128xf32>
    %39 = arith.addf %36, %38 : vector<16x128xf32>
    %cst_15 = arith.constant 0.000000e+00 : f32
    %40 = vector.broadcast %cst_15 : f32 to vector<16x128xf32>
    %41 = arith.maximumf %39, %40 : vector<16x128xf32>
    %42 = arith.truncf %41 : vector<16x128xf32> to vector<16x128xbf16>
    %c0_16 = arith.constant 0 : index
    %c0_17 = arith.constant 0 : index
    %43 = vector.load %arg4[%c0_16, %c0_17] : memref<128x128xbf16, #tpu.memory_space<vmem>>, vector<128x128xbf16>
    %cst_18 = arith.constant dense<0.000000e+00> : vector<16x128xf32>
    %44 = tpu.matmul %42, %43, %cst_18 {dimension_numbers = #tpu.dot_dimension_numbers<[1], [0], [0], [1], [0, 0, 1, 1], [], []>} : vector<16x128xbf16>, vector<128x128xbf16>, vector<16x128xf32> -> vector<16x128xf32>
    %45 = arith.truncf %44 : vector<16x128xf32> to vector<16x128xbf16>
    %cst_19 = arith.constant dense<0.000000e+00> : vector<16x128xf32>
    %46 = tpu.matmul %30, %45, %cst_19 {dimension_numbers = #tpu.dot_dimension_numbers<[1], [0], [0], [1], [0, 0, 1, 1], [], []>} : vector<16x16xbf16>, vector<16x128xbf16>, vector<16x128xf32> -> vector<16x128xf32>
    %c0_20 = arith.constant 0 : index
    %c0_21 = arith.constant 0 : index
    %47 = vector.load %arg5[%c0_20, %c0_21] : memref<1x128xf32, #tpu.memory_space<vmem>>, vector<1x128xf32>
    %48 = vector.broadcast %47 : vector<1x128xf32> to vector<16x128xf32>
    %49 = arith.addf %46, %48 : vector<16x128xf32>
    %50 = tpu.iota {dimensions = array<i32: 1>} : vector<16x128xi32>
    %c4_i32 = arith.constant 4 : i32
    %51 = vector.broadcast %c4_i32 : i32 to vector<16x128xi32>
    %52 = arith.cmpi slt, %50, %51 : vector<16x128xi32>
    %cst_22 = arith.constant -1.000000e+30 : f32
    %53 = vector.broadcast %cst_22 : f32 to vector<16x128xf32>
    %54 = arith.select %52, %49, %53 : vector<16x128xi1>, vector<16x128xf32>
    %cst_23 = arith.constant dense<0xFF800000> : vector<16xf32>
    %55 = vector.multi_reduction <maximumf>, %54, %cst_23 [1] : vector<16x128xf32> to vector<16xf32>
    %56 = vector.shape_cast %55 : vector<16xf32> to vector<16x1xf32>
    %57 = vector.broadcast %56 : vector<16x1xf32> to vector<16x128xf32>
    %58 = arith.subf %54, %57 : vector<16x128xf32>
    %59 = math.exp %58 : vector<16x128xf32>
    %cst_24 = arith.constant dense<0.000000e+00> : vector<16xf32>
    %60 = vector.multi_reduction <add>, %59, %cst_24 [1] : vector<16x128xf32> to vector<16xf32>
    %61 = vector.shape_cast %60 : vector<16xf32> to vector<16x1xf32>
    %62 = math.log %61 : vector<16x1xf32>
    %63 = vector.broadcast %62 : vector<16x1xf32> to vector<16x128xf32>
    %64 = arith.subf %58, %63 : vector<16x128xf32>
    %c0_25 = arith.constant 0 : index
    %c0_26 = arith.constant 0 : index
    %65 = vector.load %arg6[%c0_25, %c0_26] : memref<16x128xf32, #tpu.memory_space<vmem>>, vector<16x128xf32>
    tpu.vector_store %arg6[%c0_25, %c0_26], %64 {strides = array<i32>} : memref<16x128xf32, #tpu.memory_space<vmem>>, vector<16x128xf32>,
    return
  }
}

</mosaic_0001>

<bundles_post_ra>
// kernel: gcn_forward.1
= control target key start
LH: loop header
LB: loop body
LE: loop exit
PB: predicated region body
PF: predicated region fallthrough
CT: control target
= control target key end

     0   :  { %11 = vsyncpa [#allocation3], 0  ;;  %s581_s21 = smov [#allocation2]   ;;  %s693_s0 = inlined_call_operand.vmem [shape: s32[2,128], index: 0, kind: input, shape index: {}]   ;;  %s694_s1 = inlined_call_operand.vmem [shape: f32[16,32], index: 1, kind: input, shape index: {}]   ;;  %s695_s2 = inlined_call_operand.vmem [shape: bf16[32,128], index: 2, kind: input, shape index: {}]   ;;  %s696_s3 = inlined_call_operand.vmem [shape: f32[1,128], index: 3, kind: input, shape index: {}]   ;;  %s697_s4 = inlined_call_operand.hbm [shape: bf16[128,128], index: 4, kind: input, shape index: {}]   ;;  %s698_s5 = inlined_call_operand.vmem [shape: f32[1,128], index: 5, kind: input, shape index: {}]   ;;  %s699_s6 = inlined_call_operand.vmem [shape: f32[16,128], index: 6, kind: output, shape index: {}]  }
   0x1   :  { %s25_s22 = sshll.u32 %s581_s21, 4  ;;  %s557_s25 = scalar_lea.hbm %s697_s4, 1024  ;;  %s26_s22 = int_to_ptr.vmem [resolvable:$true] %s25_s22 }
   0x2   :  { %p558_p0 = scmp.ne.s32.totalorder %s697_s4, %s557_s25  ;;  %p561_p1 = scmp.lt.u32.totalorder %s557_s25, %s697_s4 }
   0x4   :  { %p563_p2 = pnand %p561_p1, %p558_p0 }
   0x6   :  { %566 = shalt.err (!%p563_p2)
}
   0x7   :  { %s567_s30 = scalar_lea.vmem %s26_s22, 1024  ;;  %p572_p4 = scmp.lt.s32.totalorder %s26_s22, %s26_s22 }
   0x8   :  { %p568_p3 = scmp.ne.s32.totalorder %s26_s22, %s567_s30  ;;  %p573_p5 = scmp.lt.s32.totalorder %s567_s30, %s567_s30 }
   0xa   :  { %p574_p6 = por %p573_p5, %p572_p4 }
   0xc   :  { %p575_p7 = pnand %p574_p6, %p568_p3 }
   0xe   :  { %578 = shalt.err (!%p575_p7)
}
   0xf   :  { %s582_s7 = smov 64   ;;  %s583_s8 = smov 4  }
  0x10   :  { %31 = dma.hbm_to_vmem [thread:$0]  %s697_s4, 1024, %s26_s22, [#allocation3], %s582_s7, %s582_s7, %s583_s8  }
  0x11   :  { %579 = dma.done.wait [#allocation3], 1024  }
  0x12   :  { %580 = vsyncadd [#allocation3], 4294966272  ;;  %v38_v0 = vlaneseq  ;;  %v584_v1 = vmov 0.0   ;;  %vm585_vm0 = vmmov 0   ;;  %v438_v4 = vld [vmem:[%s693_s0] ss:$0 sm:$0xff] }
  0x13   :  { %481 = vmatprep.subr.bf16.mxu0 %v584_v1  ;;  %483 = vmatprep.mubr.msk.bf16.mxu0 %vm585_vm0, %v584_v1  ;;  %v441_v5 = vld [vmem:[%s693_s0 + $0x1] ss:$0 sm:$0xff]  ;;  %v586_v6 = vmov 1.0|1.0   ;;  %v534_v8 = vld [vmem:[%s695_s2 + $0x8] sm:$0xff]   ;;  %vm152_vm7 = vcmask 261120  }
  0x14   :  { %v39_v2 = vshrl.u32 %v38_v0, 7  ;;  %501 = vmatprep.subr.bf16.mxu1 %v584_v1  ;;  %517 = vmatprep.mubr.msk.bf16.mxu1 %vm585_vm0, %v584_v1  ;;  %v533_v7 = vld [vmem:[%s695_s2] sm:$0xff]   ;;  %v134_v10 = vld [vmem:[%s694_s1 + $0x8] sm:$0xff]  ;;  %vm108_vm8 = vcmask 130048   ;;  %v537_v28 = vld [vmem:[#allocation2 + $0x10] sm:$0xff]  }
  0x15   :  { %v133_v9 = vld [vmem:[%s694_s1] sm:$0xff]  ;;  %v536_v27 = vld [vmem:[#allocation2 + $0x8] sm:$0xff]   ;;  %v538_v29 = vld [vmem:[#allocation2 + $0x18] sm:$0xff]  }
  0x16   :  { %v40_v3 = vadd.s32 8, %v39_v2  ;;  %vm46_vm1 = vcmp.eq.s32.totalorder %v39_v2, %v438_v4  ;;  %vm58_vm3 = vcmp.eq.s32.totalorder %v39_v2, %v441_v5  ;;  %v135_v11 = vpack.c.bf16 %v134_v10, %v133_v9  ;;  %v535_v26 = vld [vmem:[#allocation2] sm:$0xff]   ;;  %v540_v31 = vld [vmem:[#allocation2 + $0x28] sm:$0xff]   ;;  %v541_v51 = vld [vmem:[#allocation2 + $0x30] sm:$0xff]  }
  0x17   :  { %502 = vmatpush3.bf16.msra.mxu1 %v535_v26  ;;  %v539_v30 = vld [vmem:[#allocation2 + $0x20] sm:$0xff]   ;;  %v542_v52 = vld [vmem:[#allocation2 + $0x38] sm:$0xff]  }
  0x18   :  { %vm47_vm2 = vcmp.eq.s32.totalorder %v40_v3, %v438_v4  ;;  %vm59_vm4 = vcmp.eq.s32.totalorder %v40_v3, %v441_v5  ;;  %503 = vmatprep.subr.bf16.mxu1 %v584_v1  ;;  %v451_v53 = vld [vmem:[%s696_s3] ss:$0 sm:$0xff]  ;;  %v407_v5 = vand.u32 127, %v38_v0 }
  0x19   :  { %vm444_vm5 = vmpackc.low %vm47_vm2, %vm46_vm1 }
  0x1a   :  { %482 = vmatpush3.bf16.xpose.msk.msra.mxu0 %vm444_vm5, %v586_v6  ;;  %vm446_vm6 = vmpackc.low %vm59_vm4, %vm58_vm3  ;;  %vm408_vm9 = vcmp.lt.s32.totalorder %v407_v5, 4 }
  0x1b   :  { %487 = vmatprep.subr.bf16.mxu0 %v584_v1  ;;  %504 = vmatpush3.bf16.msra.mxu1 %v536_v27 }
  0x1c   :  { %505 = vmatprep.subr.bf16.mxu1 %v584_v1 }
  0x1f   :  { %506 = vmatpush3.bf16.msra.mxu1 %v537_v28 }
  0x20   :  { %507 = vmatprep.subr.bf16.mxu1 %v584_v1 }
  0x21   :  { %484 = vmatmul.mubr.msk.bf16.vlgmr.msra.gmra.mrb[0].mxu0 %vm446_vm6, %v586_v6  ;;  %v461_v6 = vld [vmem:[%s698_s5] ss:$0 sm:$0xff] }
  0x22   :  { %488 = vmatpush3.bf16.msra.mxu0 %v533_v7  ;;  %491 = vmatprep.mubr.msk.bf16.mxu0 %vm585_vm0, %v584_v1 }
  0x23   :  { %489 = vmatprep.subr.bf16.mxu0 %v584_v1  ;;  %508 = vmatpush3.bf16.msra.mxu1 %v538_v29 }
  0x24   :  { %509 = vmatprep.subr.bf16.mxu1 %v584_v1 }
  0x26   :  { %490 = vmatpush3.bf16.msra.mxu0 %v534_v8 }
  0x27   :  { %495 = vmatprep.subr.bf16.mxu0 %v584_v1  ;;  %510 = vmatpush3.bf16.msra.mxu1 %v539_v30 }
  0x28   :  { %511 = vmatprep.subr.bf16.mxu1 %v584_v1 }
  0x29   :  { %492 = vmatmul.mubr.msk.bf16.vlgmr.msra.gmra.mrb[4].mxu0 %vm152_vm7, %v135_v11 }
  0x2a   :  { %497 = vmatprep.mubr.msk.bf16.mxu0 %vm585_vm0, %v584_v1 }
  0x2b   :  { %512 = vmatpush3.bf16.msra.mxu1 %v540_v31 }
  0x2c   :  { %513 = vmatprep.subr.bf16.mxu1 %v584_v1 }
  0x2f   :  { %514 = vmatpush3.bf16.msra.mxu1 %v541_v51 }
  0x30   :  { %515 = vmatprep.subr.bf16.mxu1 %v584_v1 }
  0x33   :  { %516 = vmatpush3.bf16.msra.mxu1 %v542_v52 }
  0xf4   :  { %v99_v12 = vpop.f32.mrb[0].mxu0 }
  0xf5   :  { %v106_v13 = vmin.f32 %v99_v12, 1.0  ;;  %v485_v14 = vpop.f32.mrb[1].mxu0 }
  0xf6   :  { %v102_v15 = vpop.f32.mrb[2].mxu0 }
  0xf7   :  { %v107_v16 = vmin.f32 %v102_v15, 1.0  ;;  %v486_v17 = vpop.f32.mrb[3].mxu0  ;;  %v109_v18 = vsel %vm108_vm8, %v106_v13, 0.0 }
  0xf8   :  { %110 = vadd.xlane.f32.xlu0 %v109_v18 }
  0xf9   :  { %v112_v19 = vsel %vm108_vm8, %v107_v16, 0.0 }
  0xfa   :  { %v119_v20 = vadd.f32 %v112_v19, %v109_v18 }
  0xfc   :  { %113 = vadd.xlane.f32.xlu0 %v112_v19  ;;  %v190_v21 = vpop.f32.mrb[4].mxu0  ;;  %v120_v32 = vrot.slane %v119_v20, 4 }
  0xfd   :  { %v493_v22 = vpop.f32.mrb[5].mxu0 }
  0xfe   :  { %v193_v23 = vpop.f32.mrb[6].mxu0  ;;  %v121_v33 = vadd.f32 %v120_v32, %v119_v20 }
  0xff   :  { %v494_v24 = vpop.f32.mrb[7].mxu0  ;;  %v197_v25 = vpack.c.bf16 %v193_v23, %v190_v21 }
 0x100   :  { %v122_v34 = vrot.slane %v121_v33, 2 }
 0x101   :  { %496 = vmatpush3.bf16.msra.mxu0 %v197_v25 }
 0x102   :  { %521 = vmatprep.subr.bf16.mxu0 %v584_v1  ;;  %v123_v35 = vadd.f32 %v122_v34, %v121_v33 }
 0x104   :  { %v124_v36 = vrot.slane %v123_v35, 1 }
 0x106   :  { %v125_v38 = vadd.f32 %v124_v36, %v123_v35 }
 0x108   :  { %v126_v41 = vmax.f32 %v125_v38, 1.0 }
 0x185   :  { %v111_v37 = vpop.xlane.xlu0 %110 }
 0x186   :  { %v115_v39 = vmax.f32 %v111_v37, 1.0 }
 0x188   :  { %543 = vrsqrt.f32 %v115_v39 }
 0x189   :  { %v114_v40 = vpop.xlane.xlu0 %113 }
 0x18a   :  { %v116_v42 = vmax.f32 %v114_v40, 1.0 }
 0x18c   :  { %545 = vrsqrt.f32 %v116_v42 }
 0x18d   :  { %547 = vrsqrt.f32 %v126_v41 }
 0x192   :  { %v544_v43 = vpop.eup %543 }
 0x193   :  { %v128_v44 = vmul.f32 %v544_v43, %v106_v13 }
 0x196   :  { %v546_v45 = vpop.eup %545 }
 0x197   :  { %v129_v46 = vmul.f32 %v546_v45, %v107_v16  ;;  %v548_v47 = vpop.eup %547 }
 0x198   :  { %v130_v48 = vmul.f32 %v548_v47, %v128_v44 }
 0x199   :  { %v131_v49 = vmul.f32 %v548_v47, %v129_v46 }
 0x19b   :  { %v132_v50 = vpack.c.bf16 %v131_v49, %v130_v48 }
 0x19d   :  { %498 = vmatmul.mubr.msk.bf16.vlgmr.msra.gmra.mrb[8].mxu0 %vm108_vm8, %v132_v50 }
 0x19e   :  { %523 = vmatprep.mubr.msk.bf16.mxu0 %vm585_vm0, %v584_v1 }
 0x270   :  { %v242_v54 = vpop.f32.mrb[8].mxu0 }
 0x271   :  { %v243_v55 = vadd.f32 %v451_v53, %v242_v54  ;;  %v499_v56 = vpop.f32.mrb[9].mxu0 }
 0x272   :  { %v245_v57 = vpop.f32.mrb[10].mxu0 }
 0x273   :  { %v246_v58 = vadd.f32 %v451_v53, %v245_v57  ;;  %v500_v59 = vpop.f32.mrb[11].mxu0  ;;  %v249_v60 = vmax.f32 %v243_v55, 0.0 }
 0x275   :  { %v250_v61 = vmax.f32 %v246_v58, 0.0 }
 0x277   :  { %v251_v62 = vpack.c.bf16 %v250_v61, %v249_v60 }
 0x279   :  { %518 = vmatmul.mubr.bf16.vlgmr.msra.gmra.mrb[0].mxu1 %v251_v62 }
 0x34c   :  { %v350_v63 = vpop.f32.mrb[0].mxu1 }
 0x34d   :  { %v519_v2 = vpop.f32.mrb[1].mxu1 }
 0x34e   :  { %v353_v3 = vpop.f32.mrb[2].mxu1 }
 0x34f   :  { %v357_v1 = vpack.c.bf16 %v353_v3, %v350_v63  ;;  %v520_v4 = vpop.f32.mrb[3].mxu1 }
 0x351   :  { %522 = vmatpush3.bf16.msra.mxu0 %v357_v1 }
 0x354   :  { %524 = vmatmul.mubr.msk.bf16.vlgmr.msra.gmra.mrb[12].mxu0 %vm108_vm8, %v132_v50 }
 0x427   :  { %v399_v7 = vpop.f32.mrb[12].mxu0 }
 0x428   :  { %v400_v8 = vadd.f32 %v461_v6, %v399_v7  ;;  %v525_v9 = vpop.f32.mrb[13].mxu0 }
 0x429   :  { %v402_v10 = vpop.f32.mrb[14].mxu0 }
 0x42a   :  { %v403_v11 = vadd.f32 %v461_v6, %v402_v10  ;;  %v526_v12 = vpop.f32.mrb[15].mxu0  ;;  %v409_v13 = vsel %vm408_vm9, %v400_v8, -1e+30 }
 0x42b   :  { %411 = vmax.xlane.f32.xlu1 %v409_v13 }
 0x42c   :  { %v410_v14 = vsel %vm408_vm9, %v403_v11, -1e+30 }
 0x42f   :  { %413 = vmax.xlane.f32.xlu1 %v410_v14 }
 0x4b8   :  { %v412_v15 = vpop.xlane.xlu1 %411 }
 0x4b9   :  { %v415_v16 = vsub.f32 %v409_v13, %v412_v15 }
 0x4bb   :  { %v417_v17 = vmul.f32 1.442695, %v415_v16 }
 0x4bc   :  { %v414_v18 = vpop.xlane.xlu1 %413 }
 0x4bd   :  { %549 = vpow2.f32 %v417_v17  ;;  %v416_v0 = vsub.f32 %v410_v14, %v414_v18 }
 0x4bf   :  { %v419_v19 = vmul.f32 1.442695, %v416_v0 }
 0x4c1   :  { %551 = vpow2.f32 %v419_v19 }
 0x4c7   :  { %v550_v20 = vpop.eup %549 }
 0x4c8   :  { %421 = vadd.xlane.f32.xlu0 %v550_v20 }
 0x4cb   :  { %v552_v21 = vpop.eup %551 }
 0x4cc   :  { %423 = vadd.xlane.f32.xlu1 %v552_v21 }
 0x555   :  { %v422_v22 = vpop.xlane.xlu0 %421 }
 0x556   :  { %553 = vlog2.f32 %v422_v22 }
 0x559   :  { %v424_v23 = vpop.xlane.xlu1 %423 }
 0x55a   :  { %555 = vlog2.f32 %v424_v23 }
 0x560   :  { %v554_v24 = vpop.eup %553 }
 0x561   :  { %v426_v25 = vmul.f32 0.6931472, %v554_v24 }
 0x563   :  { %v429_v26 = vsub.f32 %v415_v16, %v426_v25 }
 0x564   :  { %v556_v27 = vpop.eup %555 }
 0x565   :  { %431 = vst [vmem:[%s699_s6] sm:$0xff] %v429_v26  ;;  %v428_v28 = vmul.f32 0.6931472, %v556_v27 }
 0x567   :  { %v430_v29 = vsub.f32 %v416_v0, %v428_v28 }
 0x569   :  { %432 = vst [vmem:[%s699_s6 + $0x8] sm:$0xff] %v430_v29 }
 0x56a   :  { %437 = vsyncpa [#allocation3], 1 }

</bundles_post_ra>
